<compile_context>
chip_gen: v7x
topology: tpu7x:2x2x1
jax: 0.10.0
libtpu: 0.0.40
codegen_flags: <defaults>
</compile_context>

<pallas_src>
import jax
import jax.numpy as jnp
from jax.experimental import pallas as pl
from jax.experimental.pallas import tpu as pltpu


def syn_encoder_kernel(
    x_ref, c_ref,                 # (TB, data_dim) f32, (TB, c_dim) f32
    w1c_ref, b1c_ref,             # c_processor layer 1: (c_dim, c_dim) f32, (1, c_dim) f32
    wn1x_ref, wn1c_ref, bn1_ref,  # net layer 1 (c-branch pre-composed with c_processor layer 2):
                                  #   (data_dim, H) f32, (c_dim, H) f32, (1, H) f32
    a_ref,                        # PReLU scalar in SMEM, shape (1, 1) f32
    wo_ref, bo_ref,               # net layer 2 composed with fused mu||logvar head:
                                  #   (H, 2L) f32, (1, 2L) f32
    out_ref,                      # output: (TB, 2L) bf16  (mu || logvar)
):
    f32 = jnp.float32

    x = x_ref[...]
    c = c_ref[...]

    # ---- c_processor layer 1: Linear -> ReLU ----
    h1 = jnp.maximum(
        jnp.dot(c, w1c_ref[...], preferred_element_type=f32) + b1c_ref[...], 0.0)

    # ---- net layer 1 on cat([x, c2]) with c_processor layer 2 folded in ----
    pre = (jnp.dot(x, wn1x_ref[...], preferred_element_type=f32)
           + jnp.dot(h1, wn1c_ref[...], preferred_element_type=f32)
           + bn1_ref[...])

    # ---- PReLU (single shared parameter, read from SMEM) ----
    a = a_ref[0, 0]
    h = jnp.where(pre > 0.0, pre, a * pre)

    # ---- net layer 2 + fused mu||logvar head (pre-composed): one (H, 2L) matmul ----
    out = jnp.dot(h, wo_ref[...], preferred_element_type=f32) + bo_ref[...]
    out_ref[...] = out.astype(out_ref.dtype)


def _round_up(n, m):
    return ((n + m - 1) // m) * m


def prepare_params(params):
    """One-time (init-time) weight prep: compose adjacent Linear pairs in f32 and fuse heads.

    Hoisted out of the forward path so no per-call XLA prep ops run in front of the kernel.
    """
    f32 = jnp.float32
    hi = jax.lax.Precision.HIGHEST

    w1c = params["w1c"].astype(f32)
    b1c = params["b1c"].astype(f32)
    wn1x = params["wn1x"].astype(f32)

    # c_processor layer 2 folded into net layer 1's c-branch (no nonlinearity between them).
    wn1c_f = jnp.dot(params["w2c"].astype(f32), params["wn1c"].astype(f32), precision=hi)
    bn1_f = params["bn1"].astype(f32) + jnp.dot(
        params["b2c"].astype(f32), params["wn1c"].astype(f32), precision=hi)

    # net layer 2 folded into the fused mu||logvar head (no nonlinearity between them).
    wh = jnp.concatenate([params["wmu"], params["wlv"]], axis=1).astype(f32)
    bh = jnp.concatenate([params["bmu"], params["blv"]], axis=1).astype(f32)
    wo_f = jnp.dot(params["wn2"].astype(f32), wh, precision=hi)
    bo_f = jnp.dot(params["bn2"].astype(f32), wh, precision=hi) + bh

    return {
        "w1c": w1c, "b1c": b1c,
        "wn1x": wn1x, "wn1c": wn1c_f, "bn1": bn1_f,
        "prelu_a": params["prelu_a"].astype(f32),   # (1, 1), lives in SMEM
        "wo": wo_f, "bo": bo_f,
    }


def syn_encoder_forward(x, c, kparams, *, batch_tile=256, out_dtype=jnp.bfloat16):
    """Forward pass. `kparams` must come from prepare_params() (composed / fused weights)."""
    B, data_dim = x.shape
    c_dim = c.shape[1]
    H = kparams["wn1x"].shape[1]
    two_L = kparams["wo"].shape[1]
    L = two_L // 2

    # Batch tile: multiple of 8 (sublane), capped at batch_tile, and also capped at ~B/2
    # (rounded up to 8) so the parallel grid axis has >=2 steps whenever possible — keeps
    # both v7x TensorCores busy and keeps f32 intermediates small in the vreg file.
    tb = max(8, min(batch_tile, _round_up(-(-B // 2), 8)))
    grid = (pl.cdiv(B, tb),)   # ragged last block: Pallas pads reads / clips writes

    def batch_spec(feat):
        return pl.BlockSpec((tb, feat), lambda i: (i, 0))

    def resident(arr):
        # Whole array as a single block, constant index_map -> stays resident in VMEM.
        return pl.BlockSpec(arr.shape, lambda i: (0, 0))

    smem_spec = pl.BlockSpec(memory_space=pltpu.MemorySpace.SMEM)

    w1c, b1c = kparams["w1c"], kparams["b1c"]
    wn1x, wn1c, bn1 = kparams["wn1x"], kparams["wn1c"], kparams["bn1"]
    prelu_a = kparams["prelu_a"]
    wo, bo = kparams["wo"], kparams["bo"]

    # Advisory cost estimate for XLA's scheduler.
    flops = 2 * B * (c_dim * c_dim + data_dim * H + c_dim * H + H * two_L)
    weight_bytes = sum(
        int(a.size) * a.dtype.itemsize
        for a in (w1c, b1c, wn1x, wn1c, bn1, wo, bo)
    )
    bytes_accessed = (int(x.size) * x.dtype.itemsize
                      + int(c.size) * c.dtype.itemsize
                      + B * two_L * jnp.dtype(out_dtype).itemsize
                      + weight_bytes)

    heads = pl.pallas_call(
        syn_encoder_kernel,
        out_shape=jax.ShapeDtypeStruct((B, two_L), out_dtype),
        grid=grid,
        in_specs=[
            batch_spec(data_dim), batch_spec(c_dim),
            resident(w1c), resident(b1c),
            resident(wn1x), resident(wn1c), resident(bn1),
            smem_spec,
            resident(wo), resident(bo),
        ],
        out_specs=pl.BlockSpec((tb, two_L), lambda i: (i, 0)),
        compiler_params=pltpu.CompilerParams(dimension_semantics=("parallel",)),
        cost_estimate=pl.CostEstimate(
            flops=flops, transcendentals=0, bytes_accessed=bytes_accessed),
    )(
        x, c,
        w1c, b1c,
        wn1x, wn1c, bn1,
        prelu_a,
        wo, bo,
    )

    mu = heads[:, :L]
    logvar = heads[:, L:]
    return mu, logvar


def init_params(key, data_dim, c_dim, latent_dim, hidden):
    """Deterministic synthetic parameters. Linear weights stored as (in, out), f32."""
    ks = jax.random.split(key, 8)

    def lin(k, fan_in, fan_out):
        kw, kb = jax.random.split(k)
        scale = 1.0 / jnp.sqrt(fan_in)
        w = jax.random.uniform(kw, (fan_in, fan_out), jnp.float32, -scale, scale)
        b = jax.random.uniform(kb, (1, fan_out), jnp.float32, -scale, scale)
        return w, b

    w1c, b1c = lin(ks[0], c_dim, c_dim)
    w2c, b2c = lin(ks[1], c_dim, c_dim)
    # net layer 1 takes cat([x, c]) of width data_dim + c_dim; split the (in, out) weight.
    wn1, bn1 = lin(ks[2], data_dim + c_dim, hidden)
    wn1x, wn1c = wn1[:data_dim, :], wn1[data_dim:, :]
    wn2, bn2 = lin(ks[3], hidden, latent_dim)
    wmu, bmu = lin(ks[4], latent_dim, latent_dim)
    wlv, blv = lin(ks[5], latent_dim, latent_dim)

    return {
        "w1c": w1c, "b1c": b1c, "w2c": w2c, "b2c": b2c,
        "wn1x": wn1x, "wn1c": wn1c, "bn1": bn1,
        "prelu_a": jnp.full((1, 1), 0.25, jnp.float32),  # nn.PReLU() default init
        "wn2": wn2, "bn2": bn2,
        "wmu": wmu, "bmu": bmu, "wlv": wlv, "blv": blv,
    }


def reference_forward(x, c, p):
    """Plain-JAX f32 reference mirroring the PyTorch module (uncomposed weights)."""
    h1 = jnp.maximum(jnp.dot(c, p["w1c"]) + p["b1c"], 0.0)
    c2 = jnp.dot(h1, p["w2c"]) + p["b2c"]
    pre = jnp.dot(x, p["wn1x"]) + jnp.dot(c2, p["wn1c"]) + p["bn1"]
    a = p["prelu_a"][0, 0]
    h = jnp.where(pre > 0.0, pre, a * pre)
    z = jnp.dot(h, p["wn2"]) + p["bn2"]
    return jnp.dot(z, p["wmu"]) + p["bmu"], jnp.dot(z, p["wlv"]) + p["blv"]


if __name__ == "__main__":
    # Small shapes consistent with the module: c_dim = len(range(1, 6)) = 5.
    B, data_dim, c_dim, latent_dim, hidden = 8, 16, 5, 8, 16

    key = jax.random.PRNGKey(0)
    kx, kc, kp = jax.random.split(key, 3)
    x = jax.random.normal(kx, (B, data_dim), jnp.float32)
    c = jax.random.normal(kc, (B, c_dim), jnp.float32)

    params = init_params(kp, data_dim, c_dim, latent_dim, hidden)
    kernel_params = prepare_params(params)   # one-time weight prep, hoisted out of forward

    mu, logvar = syn_encoder_forward(x, c, kernel_params)
    jax.block_until_ready((mu, logvar))

    mu_ref, lv_ref = reference_forward(x, c, params)
    assert mu.shape == (B, latent_dim) and logvar.shape == (B, latent_dim)
    assert jnp.allclose(mu.astype(jnp.float32), mu_ref, atol=2e-2, rtol=2e-2)
    assert jnp.allclose(logvar.astype(jnp.float32), lv_ref, atol=2e-2, rtol=2e-2)

    print("KERNEL_OK")
</pallas_src>

<mosaic_0001>
module attributes {stable_mosaic.version = 11 : i64} {
  func.func @syn_encoder_kernel(%arg0: i32, %arg1: memref<8x16xf32, #tpu.memory_space<vmem>>, %arg2: memref<8x5xf32, #tpu.memory_space<vmem>>, %arg3: memref<5x5xf32, #tpu.memory_space<vmem>>, %arg4: memref<1x5xf32, #tpu.memory_space<vmem>>, %arg5: memref<16x16xf32, #tpu.memory_space<vmem>>, %arg6: memref<5x16xf32, #tpu.memory_space<vmem>>, %arg7: memref<1x16xf32, #tpu.memory_space<vmem>>, %arg8: memref<1x1xf32, #tpu.memory_space<smem>>, %arg9: memref<16x16xf32, #tpu.memory_space<vmem>>, %arg10: memref<1x16xf32, #tpu.memory_space<vmem>>, %arg11: memref<8x16xbf16, #tpu.memory_space<vmem>>) attributes {dimension_semantics = [#tpu.dimension_semantics<parallel>], iteration_bounds = array<i64: 1>, scalar_prefetch = 0 : i64, scratch_operands = 0 : i64, tpu.core_type = #tpu.core_type<tc>, window_params = [{transform_indices = @transform_0, window_bounds = array<i64: 8, 16>}, {transform_indices = @transform_1, window_bounds = array<i64: 8, 5>}, {pipeline_mode = #tpu.pipeline_mode<synchronous>, transform_indices = @transform_2, window_bounds = array<i64: 5, 5>}, {pipeline_mode = #tpu.pipeline_mode<synchronous>, transform_indices = @transform_3, window_bounds = array<i64: 1, 5>}, {pipeline_mode = #tpu.pipeline_mode<synchronous>, transform_indices = @transform_4, window_bounds = array<i64: 16, 16>}, {pipeline_mode = #tpu.pipeline_mode<synchronous>, transform_indices = @transform_5, window_bounds = array<i64: 5, 16>}, {pipeline_mode = #tpu.pipeline_mode<synchronous>, transform_indices = @transform_6, window_bounds = array<i64: 1, 16>}, {transform_indices = @transform_7, window_bounds = array<i64: 1, 1>}, {pipeline_mode = #tpu.pipeline_mode<synchronous>, transform_indices = @transform_8, window_bounds = array<i64: 16, 16>}, {pipeline_mode = #tpu.pipeline_mode<synchronous>, transform_indices = @transform_9, window_bounds = array<i64: 1, 16>}, {transform_indices = @transform_10, window_bounds = array<i64: 8, 16>}]} {
    %c0 = arith.constant 0 : index
    %c0_0 = arith.constant 0 : index
    %0 = vector.load %arg1[%c0, %c0_0] : memref<8x16xf32, #tpu.memory_space<vmem>>, vector<8x16xf32>
    %c0_1 = arith.constant 0 : index
    %c0_2 = arith.constant 0 : index
    %1 = vector.load %arg2[%c0_1, %c0_2] : memref<8x5xf32, #tpu.memory_space<vmem>>, vector<8x5xf32>
    %c0_3 = arith.constant 0 : index
    %c0_4 = arith.constant 0 : index
    %2 = vector.load %arg3[%c0_3, %c0_4] : memref<5x5xf32, #tpu.memory_space<vmem>>, vector<5x5xf32>
    %cst = arith.constant dense<0.000000e+00> : vector<8x5xf32>
    %3 = tpu.matmul %1, %2, %cst {dimension_numbers = #tpu.dot_dimension_numbers<[1], [0], [0], [1], [0, 0, 1, 1], [], []>} : vector<8x5xf32>, vector<5x5xf32>, vector<8x5xf32> -> vector<8x5xf32>
    %c0_5 = arith.constant 0 : index
    %c0_6 = arith.constant 0 : index
    %4 = vector.load %arg4[%c0_5, %c0_6] : memref<1x5xf32, #tpu.memory_space<vmem>>, vector<1x5xf32>
    %5 = vector.broadcast %4 : vector<1x5xf32> to vector<8x5xf32>
    %6 = arith.addf %3, %5 : vector<8x5xf32>
    %cst_7 = arith.constant 0.000000e+00 : f32
    %7 = vector.broadcast %cst_7 : f32 to vector<8x5xf32>
    %8 = arith.maximumf %6, %7 : vector<8x5xf32>
    %c0_8 = arith.constant 0 : index
    %c0_9 = arith.constant 0 : index
    %9 = vector.load %arg5[%c0_8, %c0_9] : memref<16x16xf32, #tpu.memory_space<vmem>>, vector<16x16xf32>
    %cst_10 = arith.constant dense<0.000000e+00> : vector<8x16xf32>
    %10 = tpu.matmul %0, %9, %cst_10 {dimension_numbers = #tpu.dot_dimension_numbers<[1], [0], [0], [1], [0, 0, 1, 1], [], []>} : vector<8x16xf32>, vector<16x16xf32>, vector<8x16xf32> -> vector<8x16xf32>
    %c0_11 = arith.constant 0 : index
    %c0_12 = arith.constant 0 : index
    %11 = vector.load %arg6[%c0_11, %c0_12] : memref<5x16xf32, #tpu.memory_space<vmem>>, vector<5x16xf32>
    %cst_13 = arith.constant dense<0.000000e+00> : vector<8x16xf32>
    %12 = tpu.matmul %8, %11, %cst_13 {dimension_numbers = #tpu.dot_dimension_numbers<[1], [0], [0], [1], [0, 0, 1, 1], [], []>} : vector<8x5xf32>, vector<5x16xf32>, vector<8x16xf32> -> vector<8x16xf32>
    %13 = arith.addf %10, %12 : vector<8x16xf32>
    %c0_14 = arith.constant 0 : index
    %c0_15 = arith.constant 0 : index
    %14 = vector.load %arg7[%c0_14, %c0_15] : memref<1x16xf32, #tpu.memory_space<vmem>>, vector<1x16xf32>
    %15 = vector.broadcast %14 : vector<1x16xf32> to vector<8x16xf32>
    %16 = arith.addf %13, %15 : vector<8x16xf32>
    %c0_16 = arith.constant 0 : index
    %c0_17 = arith.constant 0 : index
    %17 = memref.load %arg8[%c0_16, %c0_17] : memref<1x1xf32, #tpu.memory_space<smem>>
    %cst_18 = arith.constant 0.000000e+00 : f32
    %18 = vector.broadcast %cst_18 : f32 to vector<8x16xf32>
    %19 = arith.cmpf ogt, %16, %18 : vector<8x16xf32>
    %20 = vector.broadcast %17 : f32 to vector<8x16xf32>
    %21 = arith.mulf %20, %16 : vector<8x16xf32>
    %22 = arith.select %19, %16, %21 : vector<8x16xi1>, vector<8x16xf32>
    %c0_19 = arith.constant 0 : index
    %c0_20 = arith.constant 0 : index
    %23 = vector.load %arg9[%c0_19, %c0_20] : memref<16x16xf32, #tpu.memory_space<vmem>>, vector<16x16xf32>
    %cst_21 = arith.constant dense<0.000000e+00> : vector<8x16xf32>
    %24 = tpu.matmul %22, %23, %cst_21 {dimension_numbers = #tpu.dot_dimension_numbers<[1], [0], [0], [1], [0, 0, 1, 1], [], []>} : vector<8x16xf32>, vector<16x16xf32>, vector<8x16xf32> -> vector<8x16xf32>
    %c0_22 = arith.constant 0 : index
    %c0_23 = arith.constant 0 : index
    %25 = vector.load %arg10[%c0_22, %c0_23] : memref<1x16xf32, #tpu.memory_space<vmem>>, vector<1x16xf32>
    %26 = vector.broadcast %25 : vector<1x16xf32> to vector<8x16xf32>
    %27 = arith.addf %24, %26 : vector<8x16xf32>
    %28 = arith.truncf %27 : vector<8x16xf32> to vector<8x16xbf16>
    %c0_24 = arith.constant 0 : index
    %c0_25 = arith.constant 0 : index
    %29 = vector.load %arg11[%c0_24, %c0_25] : memref<8x16xbf16, #tpu.memory_space<vmem>>, vector<8x16xbf16>
    tpu.vector_store %arg11[%c0_24, %c0_25], %28 {strides = array<i32>} : memref<8x16xbf16, #tpu.memory_space<vmem>>, vector<8x16xbf16>,
    return
  }
  func.func @transform_0(%arg0: i32) -> (i32, i32) {
    %c0_i32 = arith.constant 0 : i32
    %c0_i32_0 = arith.constant 0 : i32
    return %arg0, %c0_i32 : i32, i32
  }
  func.func @transform_1(%arg0: i32) -> (i32, i32) {
    %c0_i32 = arith.constant 0 : i32
    %c0_i32_0 = arith.constant 0 : i32
    return %arg0, %c0_i32 : i32, i32
  }
  func.func @transform_2(%arg0: i32) -> (i32, i32) {
    %c0_i32 = arith.constant 0 : i32
    %c0_i32_0 = arith.constant 0 : i32
    %c0_i32_1 = arith.constant 0 : i32
    return %c0_i32, %c0_i32_0 : i32, i32
  }
  func.func @transform_3(%arg0: i32) -> (i32, i32) {
    %c0_i32 = arith.constant 0 : i32
    %c0_i32_0 = arith.constant 0 : i32
    %c0_i32_1 = arith.constant 0 : i32
    return %c0_i32, %c0_i32_0 : i32, i32
  }
  func.func @transform_4(%arg0: i32) -> (i32, i32) {
    %c0_i32 = arith.constant 0 : i32
    %c0_i32_0 = arith.constant 0 : i32
    %c0_i32_1 = arith.constant 0 : i32
    return %c0_i32, %c0_i32_0 : i32, i32
  }
  func.func @transform_5(%arg0: i32) -> (i32, i32) {
    %c0_i32 = arith.constant 0 : i32
    %c0_i32_0 = arith.constant 0 : i32
    %c0_i32_1 = arith.constant 0 : i32
    return %c0_i32, %c0_i32_0 : i32, i32
  }
  func.func @transform_6(%arg0: i32) -> (i32, i32) {
    %c0_i32 = arith.constant 0 : i32
    %c0_i32_0 = arith.constant 0 : i32
    %c0_i32_1 = arith.constant 0 : i32
    return %c0_i32, %c0_i32_0 : i32, i32
  }
  func.func @transform_7(%arg0: i32) -> (i32, i32) {
    %c0_i32 = arith.constant 0 : i32
    %c0_i32_0 = arith.constant 0 : i32
    %c0_i32_1 = arith.constant 0 : i32
    return %c0_i32, %c0_i32_0 : i32, i32
  }
  func.func @transform_8(%arg0: i32) -> (i32, i32) {
    %c0_i32 = arith.constant 0 : i32
    %c0_i32_0 = arith.constant 0 : i32
    %c0_i32_1 = arith.constant 0 : i32
    return %c0_i32, %c0_i32_0 : i32, i32
  }
  func.func @transform_9(%arg0: i32) -> (i32, i32) {
    %c0_i32 = arith.constant 0 : i32
    %c0_i32_0 = arith.constant 0 : i32
    %c0_i32_1 = arith.constant 0 : i32
    return %c0_i32, %c0_i32_0 : i32, i32
  }
  func.func @transform_10(%arg0: i32) -> (i32, i32) {
    %c0_i32 = arith.constant 0 : i32
    %c0_i32_0 = arith.constant 0 : i32
    return %arg0, %c0_i32 : i32, i32
  }
}

</mosaic_0001>

<bundles_post_ra>
// kernel: tpu_custom_call.1
= control target key start
LH: loop header
LB: loop body
LE: loop exit
PB: predicated region body
PF: predicated region fallthrough
CT: control target
= control target key end

     0   :  { %16 = vsyncpa [#allocation4], 0  ;;  %s820_s0 = inlined_call_operand.hbm [shape: f32[8,16], index: 0, kind: input, shape index: {}]   ;;  %s821_s1 = inlined_call_operand.hbm [shape: f32[8,5], index: 1, kind: input, shape index: {}]   ;;  %s822_s2 = inlined_call_operand.hbm [shape: f32[5,5], index: 2, kind: input, shape index: {}]   ;;  %s823_s3 = inlined_call_operand.vmem [shape: f32[1,5], index: 3, kind: input, shape index: {}]   ;;  %s824_s4 = inlined_call_operand.vmem [shape: f32[16,16], index: 4, kind: input, shape index: {}]   ;;  %s825_s5 = inlined_call_operand.hbm [shape: f32[5,16], index: 5, kind: input, shape index: {}]   ;;  %s826_s6 = inlined_call_operand.vmem [shape: f32[1,16], index: 6, kind: input, shape index: {}]   ;;  %s827_s7 = inlined_call_operand.<no memory space> [shape: f32[1,1], index: 7, kind: input, shape index: {}]   ;;  %s828_s8 = inlined_call_operand.hbm [shape: f32[16,16], index: 8, kind: input, shape index: {}]   ;;  %s829_s9 = inlined_call_operand.vmem [shape: f32[1,16], index: 9, kind: input, shape index: {}]   ;;  %s830_s10 = inlined_call_operand.hbm [shape: bf16[8,16], index: 10, kind: output, shape index: {}]  }
   0x1   :  { %17 = vsyncpa [#allocation7], 0 }
   0x2   :  { %18 = vsyncpa [#allocation10], 0 }
   0x3   :  { %19 = vsyncpa [#allocation5], 0  ;;  %s654_s13 = smov [#allocation6]   ;;  %s655_s15 = smov [#allocation9]  }
   0x4   :  { %s36_s14 = sshll.u32 %s654_s13, 4  ;;  %s60_s16 = sshll.u32 %s655_s15, 4  ;;  %s37_s14 = int_to_ptr.vmem [resolvable:$true] %s36_s14  ;;  %s61_s16 = int_to_ptr.vmem [resolvable:$true] %s60_s16 }
   0x5   :  { %s514_s19 = scalar_lea.hbm %s821_s1, 128 }
   0x6   :  { %p515_p0 = scmp.ne.s32.totalorder %s821_s1, %s514_s19  ;;  %p518_p1 = scmp.lt.u32.totalorder %s514_s19, %s821_s1 }
   0x8   :  { %p520_p2 = pnand %p518_p1, %p515_p0 }
   0xa   :  { %523 = shalt.err (!%p520_p2)
}
   0xb   :  { %s524_s24 = scalar_lea.vmem %s37_s14, 128  ;;  %p529_p4 = scmp.lt.s32.totalorder %s37_s14, %s37_s14 }
   0xc   :  { %p525_p3 = scmp.ne.s32.totalorder %s37_s14, %s524_s24  ;;  %p530_p5 = scmp.lt.s32.totalorder %s524_s24, %s524_s24 }
   0xe   :  { %p531_p6 = por %p530_p5, %p529_p4 }
  0x10   :  { %p532_p7 = pnand %p531_p6, %p525_p3 }
  0x12   :  { %535 = shalt.err (!%p532_p7)
}
  0x13   :  { %39 = dma.hbm_to_vmem [thread:$0]  %s821_s1, 128, %s37_s14, [#allocation7]  }
  0x14   :  { %s536_s29 = scalar_lea.hbm %s825_s5, 128 }
  0x15   :  { %p537_p8 = scmp.ne.s32.totalorder %s825_s5, %s536_s29  ;;  %p540_p9 = scmp.lt.u32.totalorder %s536_s29, %s825_s5 }
  0x17   :  { %p542_p10 = pnand %p540_p9, %p537_p8 }
  0x19   :  { %545 = shalt.err (!%p542_p10)
}
  0x1a   :  { %s546_s15 = scalar_lea.vmem %s61_s16, 128  ;;  %p551_p12 = scmp.lt.s32.totalorder %s61_s16, %s61_s16 }
  0x1b   :  { %p547_p11 = scmp.ne.s32.totalorder %s61_s16, %s546_s15  ;;  %p552_p13 = scmp.lt.s32.totalorder %s546_s15, %s546_s15 }
  0x1d   :  { %p553_p0 = por %p552_p13, %p551_p12 }
  0x1f   :  { %p554_p1 = pnand %p553_p0, %p547_p11 }
  0x21   :  { %557 = shalt.err (!%p554_p1)
}
  0x22   :  { %63 = dma.hbm_to_vmem [thread:$0]  %s825_s5, 128, %s61_s16, [#allocation10]  }
  0x23   :  { %s656_s17 = smov [#allocation3]   ;;  %s657_s19 = smov [#allocation8]  }
  0x24   :  { %s26_s18 = sshll.u32 %s656_s17, 4  ;;  %s46_s20 = sshll.u32 %s657_s19, 4  ;;  %s27_s18 = int_to_ptr.vmem [resolvable:$true] %s26_s18  ;;  %s47_s20 = int_to_ptr.vmem [resolvable:$true] %s46_s20 }
  0x25   :  { %s558_s23 = scalar_lea.hbm %s820_s0, 128 }
  0x26   :  { %p559_p2 = scmp.ne.s32.totalorder %s820_s0, %s558_s23  ;;  %p562_p3 = scmp.lt.u32.totalorder %s558_s23, %s820_s0 }
  0x28   :  { %p564_p4 = pnand %p562_p3, %p559_p2 }
  0x2a   :  { %567 = shalt.err (!%p564_p4)
}
  0x2b   :  { %s568_s5 = scalar_lea.vmem %s27_s18, 128  ;;  %p573_p6 = scmp.lt.s32.totalorder %s27_s18, %s27_s18 }
  0x2c   :  { %p569_p5 = scmp.ne.s32.totalorder %s27_s18, %s568_s5  ;;  %p574_p7 = scmp.lt.s32.totalorder %s568_s5, %s568_s5 }
  0x2e   :  { %p575_p8 = por %p574_p7, %p573_p6 }
  0x30   :  { %p576_p9 = pnand %p575_p8, %p569_p5 }
  0x32   :  { %579 = shalt.err (!%p576_p9)
}
  0x33   :  { %29 = dma.hbm_to_vmem [thread:$0]  %s820_s0, 128, %s27_s18, [#allocation4]  }
  0x34   :  { %s580_s11 = scalar_lea.hbm %s822_s2, 128 }
  0x35   :  { %p581_p10 = scmp.ne.s32.totalorder %s822_s2, %s580_s11  ;;  %p584_p11 = scmp.lt.u32.totalorder %s580_s11, %s822_s2 }
  0x37   :  { %p586_p12 = pnand %p584_p11, %p581_p10 }
  0x39   :  { %589 = shalt.err (!%p586_p12)
}
  0x3a   :  { %s590_s14 = scalar_lea.vmem %s47_s20, 128  ;;  %p595_p0 = scmp.lt.s32.totalorder %s47_s20, %s47_s20 }
  0x3b   :  { %p591_p13 = scmp.ne.s32.totalorder %s47_s20, %s590_s14  ;;  %p596_p1 = scmp.lt.s32.totalorder %s590_s14, %s590_s14 }
  0x3d   :  { %p597_p2 = por %p596_p1, %p595_p0 }
  0x3f   :  { %p598_p3 = pnand %p597_p2, %p591_p13 }
  0x41   :  { %601 = shalt.err (!%p598_p3)
}
  0x42   :  { %49 = dma.hbm_to_vmem [thread:$0]  %s822_s2, 128, %s47_s20, [#allocation7]  }
  0x43   :  { %s658_s18 = smov [#allocation11]   ;;  %s602_s23 = scalar_lea.hbm %s828_s8, 256 }
  0x44   :  { %s73_s19 = sshll.u32 %s658_s18, 4  ;;  %p603_p4 = scmp.ne.s32.totalorder %s828_s8, %s602_s23  ;;  %s74_s19 = int_to_ptr.vmem [resolvable:$true] %s73_s19 }
  0x45   :  { %p606_p5 = scmp.lt.u32.totalorder %s602_s23, %s828_s8 }
  0x47   :  { %p608_p6 = pnand %p606_p5, %p603_p4 }
  0x49   :  { %611 = shalt.err (!%p608_p6)
}
  0x4a   :  { %s612_s5 = scalar_lea.vmem %s74_s19, 256  ;;  %p617_p8 = scmp.lt.s32.totalorder %s74_s19, %s74_s19 }
  0x4b   :  { %p613_p7 = scmp.ne.s32.totalorder %s74_s19, %s612_s5  ;;  %p618_p9 = scmp.lt.s32.totalorder %s612_s5, %s612_s5 }
  0x4d   :  { %p619_p10 = por %p618_p9, %p617_p8 }
  0x4f   :  { %p620_p11 = pnand %p619_p10, %p613_p7 }
  0x51   :  { %623 = shalt.err (!%p620_p11)
}
  0x52   :  { %s659_s2 = smov 128   ;;  %s660_s20 = smov 8  }
  0x53   :  { %79 = dma.hbm_to_vmem [thread:$0]  %s828_s8, 256, %s74_s19, [#allocation10], %s659_s2, %s659_s2, %s660_s20  }
  0x54   :  { %646 = dma.done.wait [#allocation4], 128  }
  0x55   :  { %647 = vsyncadd [#allocation4], 4294967168 }
  0x56   :  { %648 = dma.done.wait [#allocation7], 256  }
  0x57   :  { %649 = vsyncadd [#allocation7], 4294967040 }
  0x58   :  { %650 = dma.done.wait [#allocation10], 384  }
  0x59   :  { %651 = vsyncadd [#allocation10], 4294966912  ;;  %v661_v0 = vmov 0.0   ;;  %vm662_vm0 = vmmov 0   ;;  %vm111_vm1 = vcmask 1044480   ;;  %vm107_vm2 = vcmask 39936  }
  0x5a   :  { %473 = vmatprep.subr.mxu0 %v661_v0  ;;  %475 = vmatprep.mubr.msk.f32.mxu0 %vm662_vm0, %v661_v0  ;;  %v99_v1 = vld [vmem:[#allocation8] sm:$0x1f]  ;;  %v98_v2 = vld [vmem:[#allocation6] sm:$0xff]  ;;  %v186_v3 = vld [vmem:[%s824_s4] sm:$0xff]  ;;  %v663_v6 = vmov 0.0|0.0   ;;  %vm265_vm3 = vcmask 130048   ;;  %v349_v23 = vstv %s827_s7 }
  0x5b   :  { %478 = vmatprep.subr.mxu1 %v661_v0  ;;  %480 = vmatprep.mubr.msk.f32.mxu1 %vm662_vm0, %v661_v0  ;;  %v187_v4 = vld [vmem:[%s824_s4 + $0x8] sm:$0xff]  ;;  %v188_v7 = vld [vmem:[#allocation9] sm:$0x1f]  ;;  %v97_v8 = vld [vmem:[#allocation3] sm:$0xff]  ;;  %s664_s17 = smov [#allocation12]   ;;  %vm435_vm5 = vcmask 125952  }
  0x5c   :  { %474 = vmatpush3.msk.msra.mxu0 %vm111_vm1, %v99_v1  ;;  %v498_v5 = vpack.c.bf16 %v187_v4, %v186_v3  ;;  %479 = vmatpush3.msk.msra.mxu1 %vm111_vm1, %v188_v7  ;;  %v454_v9 = vld [vmem:[%s823_s3] ss:$0 sm:$0xff]  ;;  %v353_v17 = vld [vmem:[#allocation11 + $0x8] sm:$0xff]  ;;  %s443_s18 = sshll.u32 %s664_s17, 4  ;;  %s444_s18 = int_to_ptr.vmem [resolvable:$true] %s443_s18 }
  0x5d   :  { %476 = vmatmul.mubr.msk.f32.vlgmr.msra.gmra.mrb[0].mxu0 %vm107_vm2, %v98_v2  ;;  %497 = vmatprep.subr.bf16.mxu0 %v663_v6  ;;  %v352_v16 = vld [vmem:[#allocation11] sm:$0xff]  ;;  %p629_p13 = scmp.lt.s32.totalorder %s444_s18, %s444_s18 }
  0x5e   :  { %487 = vmatprep.mubr.msk.f32.mxu0 %vm662_vm0, %v661_v0  ;;  %499 = vmatpush3.bf16.msra.mxu0 %v498_v5  ;;  %v501_v18 = vpack.c.bf16 %v353_v17, %v352_v16  ;;  %v460_v20 = vld [vmem:[%s826_s6] ss:$0 sm:$0xff]  ;;  %s624_s6 = scalar_lea.vmem %s444_s18, 64 }
  0x5f   :  { %500 = vmatprep.subr.bf16.mxu1 %v663_v6  ;;  %v461_v27 = vld [vmem:[%s829_s9] ss:$0 sm:$0xff]  ;;  %p625_p12 = scmp.ne.s32.totalorder %s444_s18, %s624_s6  ;;  %p630_p0 = scmp.lt.s32.totalorder %s624_s6, %s624_s6 }
  0x61   :  { %488 = vmatmul.mubr.msk.f32.vlgmr.msra.gmra.mrb[2].mxu0 %vm265_vm3, %v97_v8  ;;  %p631_p1 = por %p630_p0, %p629_p13 }
  0x63   :  { %p632_p2 = pnand %p631_p1, %p625_p12 }
 0x130   :  { %v181_v10 = vpop.f32.mrb[0].mxu0 }
 0x131   :  { %v182_v11 = vadd.f32 %v454_v9, %v181_v10  ;;  %v477_v12 = vpop.f32.mrb[1].mxu0 }
 0x133   :  { %v185_v13 = vmax.f32 %v182_v11, 0.0 }
 0x134   :  { %v335_v14 = vpop.f32.mrb[2].mxu0 }
 0x135   :  { %481 = vmatmul.mubr.msk.f32.vlgmr.msra.gmra.mrb[0].mxu1 %vm107_vm2, %v185_v13  ;;  %v489_v15 = vpop.f32.mrb[3].mxu0 }
 0x136   :  { %494 = vmatprep.mubr.msk.f32.mxu1 %vm662_vm0, %v661_v0  ;;  %502 = vmatpush3.bf16.msra.mxu1 %v501_v18 }
 0x208   :  { %v261_v19 = vpop.f32.mrb[0].mxu1 }
 0x209   :  { %v336_v21 = vadd.f32 %v335_v14, %v261_v19  ;;  %v482_v22 = vpop.f32.mrb[1].mxu1 }
 0x20b   :  { %v346_v24 = vadd.f32 %v460_v20, %v336_v21 }
 0x20d   :  { %vm348_vm4 = vcmp.gt.f32.partialorder %v346_v24, 0.0  ;;  %v350_v25 = vmul.f32 %v349_v23, %v346_v24 }
 0x20f   :  { %v351_v26 = vsel %vm348_vm4, %v346_v24, %v350_v25 }
 0x210   :  { %495 = vmatmul.mubr.msk.f32.vlgmr.msra.gmra.mrb[2].mxu1 %vm265_vm3, %v351_v26 }
 0x2e3   :  { %v430_v28 = vpop.f32.mrb[2].mxu1 }
 0x2e4   :  { %v431_v29 = vadd.f32 %v461_v27, %v430_v28  ;;  %v496_v30 = vpop.f32.mrb[3].mxu1 }
 0x2e6   :  { %v434_v31 = vpack.c.bf16 %v431_v29, %v431_v29 }
 0x2e8   :  { %436 = vst.msk [vmem:[#allocation12] sm:$0xf] %vm435_vm5, %v434_v31 }
 0x2e9   :  { %635 = shalt.err (!%p632_p2)
}
 0x2ea   :  { %s636_s9 = scalar_lea.hbm %s830_s10, 64 }
 0x2eb   :  { %p637_p3 = scmp.ne.s32.totalorder %s830_s10, %s636_s9  ;;  %p640_p4 = scmp.lt.u32.totalorder %s636_s9, %s830_s10 }
 0x2ed   :  { %p642_p5 = pnand %p640_p4, %p637_p3 }
 0x2ef   :  { %645 = shalt.err (!%p642_p5)
}
 0x2f0   :  { %446 = dma.vmem_to_hbm [thread:$0]  %s444_s18, 64, %s830_s10, [#allocation5]  }
 0x2f1   :  { %652 = dma.done.wait [#allocation5], 64  }
 0x2f2   :  { %653 = vsyncadd [#allocation5], 4294967232 }
 0x2f3   :  { %450 = vsyncpa [#allocation4], 1 }
 0x2f4   :  { %451 = vsyncpa [#allocation7], 1 }
 0x2f5   :  { %452 = vsyncpa [#allocation10], 1 }
 0x2f6   :  { %453 = vsyncpa [#allocation5], 1 }

</bundles_post_ra>
